<compile_context>
chip_gen: v5e
topology: v5e:2x2
jax: 0.10.0
libtpu: 0.0.40
codegen_flags: <defaults>
</compile_context>

<pallas_src>
import jax
import jax.numpy as jnp
from jax.experimental import pallas as pl
from jax.experimental.pallas import tpu as pltpu


def _round_up(n: int, m: int) -> int:
    return ((n + m - 1) // m) * m


def policy_mlp_kernel(x_ref, w1_ref, w23_ref, b_ref, out_ref):
    """Fused 3-layer MLP forward for one batch tile.

    x_ref:   [TB, S]        f32  (true feature width, no column padding)
    w1_ref:  [S, P]         bf16 (W1, columns zero-padded to P)
    w23_ref: [2*P, P]       bf16 packed slab: rows [0,P)=W2, rows [P,2P)=W3
    b_ref:   [8, P]         f32  rows 0/1/2 = b1/b2/b3 (zero-padded)
    out_ref: [TB, A]        f32  true action width (masked narrow store)
    """
    p = w23_ref.shape[1]
    a = out_ref.shape[1]

    x = x_ref[...].astype(jnp.bfloat16)

    w1 = w1_ref[...]
    w2 = w23_ref[0:p, :]
    w3 = w23_ref[p:2 * p, :]
    b1 = b_ref[0:1, :]
    b2 = b_ref[1:2, :]
    b3 = b_ref[2:3, :]

    # lin1 + relu1 (MXU in bf16, accumulate + elementwise in f32)
    h1 = jnp.dot(x, w1, preferred_element_type=jnp.float32) + b1
    h1 = jnp.maximum(h1, 0.0)

    # lin2 + relu2
    h2 = jnp.dot(h1.astype(jnp.bfloat16), w2,
                 preferred_element_type=jnp.float32) + b2
    h2 = jnp.maximum(h2, 0.0)

    # lin3 (action logits); store only the real action columns.
    y = jnp.dot(h2.astype(jnp.bfloat16), w3,
                preferred_element_type=jnp.float32) + b3
    out_ref[...] = y[:, :a]


def pack_policy_params(params):
    """Pack {w1,b1,w2,b2,w3,b3} into kernel operands.

    Weights are stored [in_features, out_features] (kernel does x @ W).
    Hidden/action widths are zero-padded to a common lane width P (>=128);
    padding is exact (padded rows/cols contribute nothing to the result).
    """
    w1, b1 = params["w1"], params["b1"]
    w2, b2 = params["w2"], params["b2"]
    w3, b3 = params["w3"], params["b3"]

    S, H = w1.shape
    A = w3.shape[1]
    P = _round_up(max(H, A, 128), 128)   # common lane width (keep at 128)

    def pad2(a, rows, cols):
        return jnp.zeros((rows, cols), jnp.float32).at[:a.shape[0],
                                                       :a.shape[1]].set(a)

    w1p = pad2(w1, S, P).astype(jnp.bfloat16)                        # (S, P)
    w23 = jnp.concatenate([pad2(w2, P, P), pad2(w3, P, P)],
                          axis=0).astype(jnp.bfloat16)               # (2P, P)

    b_packed = jnp.zeros((8, P), jnp.float32)
    b_packed = b_packed.at[0, :H].set(b1.reshape(-1))
    b_packed = b_packed.at[1, :H].set(b2.reshape(-1))
    b_packed = b_packed.at[2, :A].set(b3.reshape(-1))

    return {"w1": w1p, "w23": w23, "b": b_packed,
            "state_dim": S, "hidden_dim": H, "action_dim": A, "p": P}


def _choose_tile(batch: int, block_b: int):
    """Pick (batch_tile, padded_batch)."""
    assert block_b % 8 == 0 and block_b >= 8, "block_b must be a multiple of 8"
    b8 = _round_up(batch, 8)
    if b8 <= 8:
        # Minimum legal f32 tile: one vreg high.
        return 8, 8
    # Prefer >= 2 grid steps (v7x megacore shards the "parallel" batch axis
    # across both TensorCores only if grid >= 2), and pick the tile closest to
    # an even split so the last tile carries < 8 padded rows per step.
    n_tiles = max(2, pl.cdiv(b8, block_b))
    tb = min(block_b, _round_up(pl.cdiv(b8, n_tiles), 8))
    b_pad = _round_up(b8, tb)
    return tb, b_pad


def policy_forward(x, packed, *, block_b: int = 2048):
    """Run the fused Policy MLP on a [B, state_dim] batch."""
    B, S = x.shape
    assert S == packed["state_dim"]
    A = packed["action_dim"]
    P = packed["p"]
    w1, w23, b_packed = packed["w1"], packed["w23"], packed["b"]

    tb, b_pad = _choose_tile(B, block_b)

    # Pad batch rows only (and only when needed); feature width stays true S.
    x_in = x if b_pad == B else jnp.pad(x, ((0, b_pad - B), (0, 0)))

    grid = (b_pad // tb,)

    grid_spec = pltpu.PrefetchScalarGridSpec(
        num_scalar_prefetch=0,
        grid=grid,
        in_specs=[
            pl.BlockSpec((tb, S), lambda i: (i, 0)),         # x tile (full S)
            pl.BlockSpec(w1.shape, lambda i: (0, 0)),        # W1 resident
            pl.BlockSpec(w23.shape, lambda i: (0, 0)),       # W2|W3 resident
            pl.BlockSpec(b_packed.shape, lambda i: (0, 0)),  # biases resident
        ],
        out_specs=pl.BlockSpec((tb, A), lambda i: (i, 0)),   # true-A output
    )

    flops = 2 * b_pad * (S * P + P * P + P * P)
    bytes_accessed = (x_in.size * 4 + w1.size * 2 + w23.size * 2
                      + b_packed.size * 4 + b_pad * A * 4)

    out = pl.pallas_call(
        policy_mlp_kernel,
        out_shape=jax.ShapeDtypeStruct((b_pad, A), jnp.float32),
        grid_spec=grid_spec,
        compiler_params=pltpu.CompilerParams(
            dimension_semantics=("parallel",)),
        cost_estimate=pl.CostEstimate(
            flops=flops, transcendentals=0, bytes_accessed=bytes_accessed),
    )(x_in, w1, w23, b_packed)

    return out if b_pad == B else out[:B]


def init_policy_params(key, state_dim, action_dim, hidden_dim=64):
    """Deterministic synthetic init (PyTorch-Linear-like uniform ranges)."""
    ks = jax.random.split(key, 6)

    def lin_init(kw, kb, fan_in, fan_out):
        bound = 1.0 / jnp.sqrt(jnp.float32(fan_in))
        w = jax.random.uniform(kw, (fan_in, fan_out), jnp.float32, -bound, bound)
        b = jax.random.uniform(kb, (fan_out,), jnp.float32, -bound, bound)
        return w, b

    w1, b1 = lin_init(ks[0], ks[1], state_dim, hidden_dim)
    w2, b2 = lin_init(ks[2], ks[3], hidden_dim, hidden_dim)
    w3, b3 = lin_init(ks[4], ks[5], hidden_dim, action_dim)
    return {"w1": w1, "b1": b1, "w2": w2, "b2": b2, "w3": w3, "b3": b3}


def policy_reference(x, params):
    """Pure-JAX f32 reference for correctness checking."""
    h = jnp.maximum(x @ params["w1"] + params["b1"], 0.0)
    h = jnp.maximum(h @ params["w2"] + params["b2"], 0.0)
    return h @ params["w3"] + params["b3"]


if __name__ == "__main__":
    # LunarLander-v2 sizes: state_dim=8, action_dim=4, hidden_dim=64.
    state_dim, action_dim, hidden_dim = 8, 4, 64

    key = jax.random.PRNGKey(0)
    k_params, k_x1, k_x2 = jax.random.split(key, 3)

    params = init_policy_params(k_params, state_dim, action_dim, hidden_dim)
    packed = pack_policy_params(params)   # done once, outside the hot loop

    # Case 1: tiny inference batch -> single 8-row tile, no padding, no slice.
    x_small = jax.random.normal(k_x1, (8, state_dim), dtype=jnp.float32)
    out_small = jax.block_until_ready(policy_forward(x_small, packed))
    ref_small = policy_reference(x_small, params)
    assert out_small.shape == (8, action_dim)
    # bf16 matmul inputs -> loosened tolerance vs. the f32 reference.
    assert jnp.allclose(out_small, ref_small, atol=2e-2, rtol=2e-2), \
        float(jnp.max(jnp.abs(out_small - ref_small)))

    # Case 2: non-multiple batch -> multi-step grid (exercises row padding,
    # >=2 "parallel" steps, and the row-only slice).
    x_med = jax.random.normal(k_x2, (50, state_dim), dtype=jnp.float32)
    out_med = jax.block_until_ready(policy_forward(x_med, packed))
    ref_med = policy_reference(x_med, params)
    assert out_med.shape == (50, action_dim)
    assert jnp.allclose(out_med, ref_med, atol=2e-2, rtol=2e-2), \
        float(jnp.max(jnp.abs(out_med - ref_med)))

    print("KERNEL_OK")
</pallas_src>

<mosaic_0001>
module attributes {stable_mosaic.version = 11 : i64} {
  func.func @policy_mlp_kernel(%arg0: i32, %arg1: memref<8x8xf32, #tpu.memory_space<vmem>>, %arg2: memref<8x128xbf16, #tpu.memory_space<vmem>>, %arg3: memref<256x128xbf16, #tpu.memory_space<vmem>>, %arg4: memref<8x128xf32, #tpu.memory_space<vmem>>, %arg5: memref<8x4xf32, #tpu.memory_space<vmem>>) attributes {dimension_semantics = [#tpu.dimension_semantics<parallel>], iteration_bounds = array<i64: 1>, scalar_prefetch = 0 : i64, scratch_operands = 0 : i64, tpu.core_type = #tpu.core_type<tc>, window_params = [{transform_indices = @transform_0, window_bounds = array<i64: 8, 8>}, {pipeline_mode = #tpu.pipeline_mode<synchronous>, transform_indices = @transform_1, window_bounds = array<i64: 8, 128>}, {pipeline_mode = #tpu.pipeline_mode<synchronous>, transform_indices = @transform_2, window_bounds = array<i64: 256, 128>}, {pipeline_mode = #tpu.pipeline_mode<synchronous>, transform_indices = @transform_3, window_bounds = array<i64: 8, 128>}, {transform_indices = @transform_4, window_bounds = array<i64: 8, 4>}]} {
    %c0 = arith.constant 0 : index
    %c0_0 = arith.constant 0 : index
    %0 = vector.load %arg1[%c0, %c0_0] : memref<8x8xf32, #tpu.memory_space<vmem>>, vector<8x8xf32>
    %1 = arith.truncf %0 : vector<8x8xf32> to vector<8x8xbf16>
    %c0_1 = arith.constant 0 : index
    %c0_2 = arith.constant 0 : index
    %2 = vector.load %arg2[%c0_1, %c0_2] : memref<8x128xbf16, #tpu.memory_space<vmem>>, vector<8x128xbf16>
    %c0_3 = arith.constant 0 : index
    %c0_4 = arith.constant 0 : index
    %3 = vector.load %arg3[%c0_3, %c0_4] : memref<256x128xbf16, #tpu.memory_space<vmem>>, vector<128x128xbf16>
    %c128 = arith.constant 128 : index
    %c0_5 = arith.constant 0 : index
    %4 = vector.load %arg3[%c128, %c0_5] : memref<256x128xbf16, #tpu.memory_space<vmem>>, vector<128x128xbf16>
    %c0_6 = arith.constant 0 : index
    %c0_7 = arith.constant 0 : index
    %5 = vector.load %arg4[%c0_6, %c0_7] : memref<8x128xf32, #tpu.memory_space<vmem>>, vector<1x128xf32>
    %c1 = arith.constant 1 : index
    %c0_8 = arith.constant 0 : index
    %6 = vector.load %arg4[%c1, %c0_8] : memref<8x128xf32, #tpu.memory_space<vmem>>, vector<1x128xf32>
    %c2 = arith.constant 2 : index
    %c0_9 = arith.constant 0 : index
    %7 = vector.load %arg4[%c2, %c0_9] : memref<8x128xf32, #tpu.memory_space<vmem>>, vector<1x128xf32>
    %cst = arith.constant dense<0.000000e+00> : vector<8x128xf32>
    %8 = tpu.matmul %1, %2, %cst {dimension_numbers = #tpu.dot_dimension_numbers<[1], [0], [0], [1], [0, 0, 1, 1], [], []>} : vector<8x8xbf16>, vector<8x128xbf16>, vector<8x128xf32> -> vector<8x128xf32>
    %9 = vector.broadcast %5 : vector<1x128xf32> to vector<8x128xf32>
    %10 = arith.addf %8, %9 : vector<8x128xf32>
    %cst_10 = arith.constant 0.000000e+00 : f32
    %11 = vector.broadcast %cst_10 : f32 to vector<8x128xf32>
    %12 = arith.maximumf %10, %11 : vector<8x128xf32>
    %13 = arith.truncf %12 : vector<8x128xf32> to vector<8x128xbf16>
    %cst_11 = arith.constant dense<0.000000e+00> : vector<8x128xf32>
    %14 = tpu.matmul %13, %3, %cst_11 {dimension_numbers = #tpu.dot_dimension_numbers<[1], [0], [0], [1], [0, 0, 1, 1], [], []>} : vector<8x128xbf16>, vector<128x128xbf16>, vector<8x128xf32> -> vector<8x128xf32>
    %15 = vector.broadcast %6 : vector<1x128xf32> to vector<8x128xf32>
    %16 = arith.addf %14, %15 : vector<8x128xf32>
    %cst_12 = arith.constant 0.000000e+00 : f32
    %17 = vector.broadcast %cst_12 : f32 to vector<8x128xf32>
    %18 = arith.maximumf %16, %17 : vector<8x128xf32>
    %19 = arith.truncf %18 : vector<8x128xf32> to vector<8x128xbf16>
    %cst_13 = arith.constant dense<0.000000e+00> : vector<8x128xf32>
    %20 = tpu.matmul %19, %4, %cst_13 {dimension_numbers = #tpu.dot_dimension_numbers<[1], [0], [0], [1], [0, 0, 1, 1], [], []>} : vector<8x128xbf16>, vector<128x128xbf16>, vector<8x128xf32> -> vector<8x128xf32>
    %21 = vector.broadcast %7 : vector<1x128xf32> to vector<8x128xf32>
    %22 = arith.addf %20, %21 : vector<8x128xf32>
    %23 = vector.extract_strided_slice %22 {offsets = [0, 0], sizes = [8, 4], strides = [1, 1]} : vector<8x128xf32> to vector<8x4xf32>
    %c0_14 = arith.constant 0 : index
    %c0_15 = arith.constant 0 : index
    %24 = vector.load %arg5[%c0_14, %c0_15] : memref<8x4xf32, #tpu.memory_space<vmem>>, vector<8x4xf32>
    tpu.vector_store %arg5[%c0_14, %c0_15], %23 {strides = array<i32>} : memref<8x4xf32, #tpu.memory_space<vmem>>, vector<8x4xf32>,
    return
  }
  func.func @transform_0(%arg0: i32) -> (i32, i32) {
    %c0_i32 = arith.constant 0 : i32
    %c0_i32_0 = arith.constant 0 : i32
    return %arg0, %c0_i32 : i32, i32
  }
  func.func @transform_1(%arg0: i32) -> (i32, i32) {
    %c0_i32 = arith.constant 0 : i32
    %c0_i32_0 = arith.constant 0 : i32
    %c0_i32_1 = arith.constant 0 : i32
    return %c0_i32, %c0_i32_0 : i32, i32
  }
  func.func @transform_2(%arg0: i32) -> (i32, i32) {
    %c0_i32 = arith.constant 0 : i32
    %c0_i32_0 = arith.constant 0 : i32
    %c0_i32_1 = arith.constant 0 : i32
    return %c0_i32, %c0_i32_0 : i32, i32
  }
  func.func @transform_3(%arg0: i32) -> (i32, i32) {
    %c0_i32 = arith.constant 0 : i32
    %c0_i32_0 = arith.constant 0 : i32
    %c0_i32_1 = arith.constant 0 : i32
    return %c0_i32, %c0_i32_0 : i32, i32
  }
  func.func @transform_4(%arg0: i32) -> (i32, i32) {
    %c0_i32 = arith.constant 0 : i32
    %c0_i32_0 = arith.constant 0 : i32
    return %arg0, %c0_i32 : i32, i32
  }
}

</mosaic_0001>

<bundles_post_ra>
// kernel: tpu_custom_call.1
= control target key start
LH: loop header
LB: loop body
LE: loop exit
PB: predicated region body
PF: predicated region fallthrough
CT: control target
= control target key end

     0   :  { %9 = vsyncpa [#allocation3], 0  ;;  %s510_s0 = inlined_call_operand.hbm [shape: f32[8,8], index: 0, kind: input, shape index: {}]   ;;  %s511_s1 = inlined_call_operand.hbm [shape: bf16[8,128], index: 1, kind: input, shape index: {}]   ;;  %s512_s2 = inlined_call_operand.hbm [shape: bf16[256,128], index: 2, kind: input, shape index: {}]   ;;  %s513_s3 = inlined_call_operand.hbm [shape: f32[8,128], index: 3, kind: input, shape index: {}]   ;;  %s514_s4 = inlined_call_operand.vmem [shape: f32[8,4], index: 4, kind: output, shape index: {}]  }
   0x1   :  { %10 = vsyncpa [#allocation5], 0  ;;  %s28_s17 = sshll.u32 %s511_s1, 4  ;;  %s29_s17 = int_to_ptr.hbm [resolvable:$true] %s28_s17 }
   0x2   :  { %11 = vsyncpa [#allocation8], 0  ;;  %s464_s18 = smov [#allocation4]   ;;  %s17_s22 = sshll.u32 %s510_s0, 4  ;;  %s18_s22 = int_to_ptr.hbm [resolvable:$true] %s17_s22 }
   0x3   :  { %s30_s19 = sshll.u32 %s464_s18, 4  ;;  %s465_s23 = smov [#allocation2]   ;;  %s31_s19 = int_to_ptr.vmem [resolvable:$true] %s30_s19 }
   0x4   :  { %33 = dma.hbm_to_vmem [thread:$0]  %s29_s17, 64, %s31_s19, [#allocation5]  }
   0x5   :  { %s19_s24 = sshll.u32 %s465_s23, 4  ;;  %s38_s27 = sshll.u32 %s512_s2, 4  ;;  %s20_s24 = int_to_ptr.vmem [resolvable:$true] %s19_s24  ;;  %s39_s27 = int_to_ptr.hbm [resolvable:$true] %s38_s27 }
   0x6   :  { %22 = dma.hbm_to_vmem [thread:$0]  %s18_s22, 128, %s20_s24, [#allocation3]  }
   0x7   :  { %s466_s1 = smov [#allocation6]   ;;  %s52_s5 = sshll.u32 %s513_s3, 4  ;;  %s53_s5 = int_to_ptr.hbm [resolvable:$true] %s52_s5 }
   0x8   :  { %s40_s28 = sshll.u32 %s466_s1, 4  ;;  %s467_s6 = smov 64   ;;  %s41_s28 = int_to_ptr.vmem [resolvable:$true] %s40_s28 }
   0x9   :  { %s468_s0 = smov 4   ;;  %s469_s7 = smov [#allocation7]  }
   0xa   :  { %46 = dma.hbm_to_vmem [thread:$0]  %s39_s27, 2048, %s41_s28, [#allocation5], %s467_s6, %s467_s6, %s468_s0  }
   0xb   :  { %s54_s8 = sshll.u32 %s469_s7, 4  ;;  %s55_s8 = int_to_ptr.vmem [resolvable:$true] %s54_s8 }
   0xc   :  { %57 = dma.hbm_to_vmem [thread:$0]  %s53_s5, 128, %s55_s8, [#allocation8]  }
   0xd   :  { %458 = dma.done.wait [#allocation3], 128  }
   0xe   :  { %459 = vsyncadd [#allocation3], 4294967168 }
   0xf   :  { %460 = dma.done.wait [#allocation5], 2112  }
  0x10   :  { %461 = vsyncadd [#allocation5], 4294965184 }
  0x11   :  { %462 = dma.done.wait [#allocation8], 128  }
  0x12   :  { %463 = vsyncadd [#allocation8], 4294967168  ;;  %vm118_vm0 = vcmask 1043456   ;;  %v77_v0 = vld [vmem:[#allocation4] sm:$0xf]  ;;  %v75_v1 = vld [vmem:[#allocation2] sm:$0xff] }
  0x13   :  { %v344_v2 = vld [vmem:[#allocation6 + $0x38] sm:$0xff]  ;;  %v120_v3 = vsel %vm118_vm0, %v77_v0, 0  ;;  %v76_v4 = vpack.c.bf16 %v75_v1, %v75_v1  ;;  %vm114_vm1 = vcmask 64512   ;;  %v343_v5 = vld [vmem:[#allocation6 + $0x30] sm:$0xff]  ;;  %v342_v6 = vld [vmem:[#allocation6 + $0x28] sm:$0xff]  ;;  %vm263_vm2 = vcmask 31744  }
  0x14   :  { %129 = vmatpush.bf16.msra.mxu0 %v120_v3  ;;  %186 = vmatpush.bf16.msra.mxu1 %v344_v2  ;;  %v341_v7 = vld [vmem:[#allocation6 + $0x20] sm:$0xff]  ;;  %v340_v8 = vld [vmem:[#allocation6 + $0x18] sm:$0xff]  ;;  %v339_v9 = vld [vmem:[#allocation6 + $0x10] sm:$0xff] }
  0x15   :  { %v338_v10 = vld [vmem:[#allocation6 + $0x8] sm:$0xff]  ;;  %v337_v11 = vld [vmem:[#allocation6] sm:$0xff]  ;;  %v352_v12 = vld [vmem:[#allocation6 + $0x78] sm:$0xff] }
  0x16   :  { %250 = vmatpush.bf16.msra.mxu2 %v352_v12  ;;  %v351_v13 = vld [vmem:[#allocation6 + $0x70] sm:$0xff]  ;;  %v350_v14 = vld [vmem:[#allocation6 + $0x68] sm:$0xff]  ;;  %v349_v15 = vld [vmem:[#allocation6 + $0x60] sm:$0xff] }
  0x17   :  { %272 = vmatmul.msk.bf16.vlgmr.msra.gmra.mxu0 %vm114_vm1, %v76_v4  ;;  %v348_v16 = vld [vmem:[#allocation6 + $0x58] sm:$0xff]  ;;  %v347_v17 = vld [vmem:[#allocation6 + $0x50] sm:$0xff]  ;;  %v359_v18 = vld [vmem:[#allocation7] ss:$0 sm:$0xff] }
  0x18   :  { %187 = vmatpush.bf16.msra.mxu1 %v343_v5  ;;  %v346_v24 = vld [vmem:[#allocation6 + $0x48] sm:$0xff]  ;;  %v345_v25 = vld [vmem:[#allocation6 + $0x40] sm:$0xff] }
  0x19   :  { %v360_v26 = vld [vmem:[#allocation7 + $0x1] ss:$0 sm:$0xff]  ;;  %v361_v32 = vld [vmem:[#allocation7 + $0x2] ss:$0 sm:$0xff] }
  0x1a   :  { %251 = vmatpush.bf16.msra.mxu2 %v351_v13 }
  0x1c   :  { %188 = vmatpush.bf16.msra.mxu1 %v342_v6 }
  0x1e   :  { %252 = vmatpush.bf16.msra.mxu2 %v350_v14 }
  0x20   :  { %189 = vmatpush.bf16.msra.mxu1 %v341_v7 }
  0x22   :  { %253 = vmatpush.bf16.msra.mxu2 %v349_v15 }
  0x24   :  { %190 = vmatpush.bf16.msra.mxu1 %v340_v8 }
  0x26   :  { %254 = vmatpush.bf16.msra.mxu2 %v348_v16 }
  0x28   :  { %191 = vmatpush.bf16.msra.mxu1 %v339_v9 }
  0x2a   :  { %255 = vmatpush.bf16.msra.mxu2 %v347_v17 }
  0x2c   :  { %192 = vmatpush.bf16.msra.mxu1 %v338_v10 }
  0x2e   :  { %256 = vmatpush.bf16.msra.mxu2 %v346_v24 }
  0x30   :  { %193 = vmatpush.bf16.msra.mxu1 %v337_v11 }
  0x32   :  { %257 = vmatpush.bf16.msra.mxu2 %v345_v25 }
  0x94   :  { %v131_v19 = vpop.f32.mrf.mxu0 }
  0x95   :  { %v132_v20 = vadd.f32 %v359_v18, %v131_v19 }
  0x97   :  { %v135_v21 = vmax.f32 %v132_v20, 0.0 }
  0x99   :  { %v136_v22 = vpack.c.bf16 %v135_v21, %v135_v21 }
  0x9b   :  { %194 = vmatmul.bf16.vlgmr.msra.gmra.mxu1 %v136_v22 }
  0x9c   :  { %v133_v23 = vpop.f32.mrf.mxu0 }
 0x118   :  { %v195_v27 = vpop.f32.mrf.mxu1 }
 0x119   :  { %v196_v28 = vadd.f32 %v360_v26, %v195_v27 }
 0x11b   :  { %v199_v29 = vmax.f32 %v196_v28, 0.0 }
 0x11d   :  { %v200_v30 = vpack.c.bf16 %v199_v29, %v199_v29 }
 0x11f   :  { %258 = vmatmul.bf16.vlgmr.msra.gmra.mxu2 %v200_v30 }
 0x120   :  { %v197_v31 = vpop.f32.mrf.mxu1 }
 0x1a2   :  { %v259_v33 = vpop.f32.mrf.mxu2 }
 0x1a3   :  { %v260_v34 = vadd.f32 %v361_v32, %v259_v33 }
 0x1a5   :  { %264 = vst.msk [vmem:[%s514_s4] sm:$0xff] %vm263_vm2, %v260_v34 }
 0x1aa   :  { %v261_v35 = vpop.f32.mrf.mxu2 }
 0x1ab   :  { %269 = vsyncpa [#allocation3], 1 }
 0x1ac   :  { %270 = vsyncpa [#allocation5], 1 }
 0x1ad   :  { %271 = vsyncpa [#allocation8], 1 }

</bundles_post_ra>
